<compile_context>
chip_gen: v5e
topology: v5e:2x2
jax: 0.10.0
libtpu: 0.0.40
codegen_flags: <defaults>
</compile_context>

<pallas_src>
import functools

import jax
import jax.numpy as jnp
from jax.experimental import pallas as pl
from jax.experimental.pallas import tpu as pltpu

# ----------------------- DenseNet-169 configuration -----------------------
GROWTH = 32
BN_SIZE = 4
BLOCK_CONFIG = (6, 12, 32, 32)       # densenet169
NUM_INIT_FEATURES = 64
BN_EPS = 1e-5
CLASS_COUNT = 5                      # small classCount for the synthetic model
NEG_BIG = -1e30                      # "minus infinity" pad value for max pool


def _rup(x, m):
    return ((x + m - 1) // m) * m


def _pad2(a, r, c, value=0.0):
    return jnp.pad(a, ((0, r - a.shape[0]), (0, c - a.shape[1])),
                   constant_values=value)


# ------------------------------ Pallas kernels ------------------------------
# Matmul kernels: grid = (M tiles, K tiles); acc_ref is an f32 VMEM accumulator
# that lives across the K axis; output is written only on the last K step.

def _k_pre(x_ref, s1_ref, b1_ref, w_ref, o_ref, acc_ref):
    # o = relu(x*s1 + b1) @ w            (BN+ReLU before a 1x1 conv)
    @pl.when(pl.program_id(1) == 0)
    def _():
        acc_ref[...] = jnp.zeros_like(acc_ref)

    a = jnp.maximum(x_ref[...].astype(jnp.float32) * s1_ref[...] + b1_ref[...],
                    0.0)
    acc_ref[...] += jnp.dot(a.astype(jnp.bfloat16), w_ref[...],
                            preferred_element_type=jnp.float32)

    @pl.when(pl.program_id(1) == pl.num_programs(1) - 1)
    def _():
        o_ref[...] = acc_ref[...].astype(o_ref.dtype)


def _k_post(x_ref, w_ref, s2_ref, b2_ref, o_ref, acc_ref):
    # o = relu((x @ w)*s2 + b2)          (conv followed by BN+ReLU)
    @pl.when(pl.program_id(1) == 0)
    def _():
        acc_ref[...] = jnp.zeros_like(acc_ref)

    acc_ref[...] += jnp.dot(x_ref[...], w_ref[...],
                            preferred_element_type=jnp.float32)

    @pl.when(pl.program_id(1) == pl.num_programs(1) - 1)
    def _():
        o_ref[...] = jnp.maximum(acc_ref[...] * s2_ref[...] + b2_ref[...],
                                 0.0).astype(o_ref.dtype)


def _k_pre_post(x_ref, s1_ref, b1_ref, w_ref, s2_ref, b2_ref, o_ref, acc_ref):
    # o = relu((relu(x*s1+b1) @ w)*s2 + b2)   (dense-layer bottleneck, fused)
    @pl.when(pl.program_id(1) == 0)
    def _():
        acc_ref[...] = jnp.zeros_like(acc_ref)

    a = jnp.maximum(x_ref[...].astype(jnp.float32) * s1_ref[...] + b1_ref[...],
                    0.0)
    acc_ref[...] += jnp.dot(a.astype(jnp.bfloat16), w_ref[...],
                            preferred_element_type=jnp.float32)

    @pl.when(pl.program_id(1) == pl.num_programs(1) - 1)
    def _():
        o_ref[...] = jnp.maximum(acc_ref[...] * s2_ref[...] + b2_ref[...],
                                 0.0).astype(o_ref.dtype)


def _k_classifier(x_ref, s1_ref, b1_ref, w_ref, bias_ref, o_ref, acc_ref):
    # o = sigmoid(relu(x*s + b) @ w + bias)   (norm5+relu+linear+sigmoid)
    @pl.when(pl.program_id(1) == 0)
    def _():
        acc_ref[...] = jnp.zeros_like(acc_ref)

    a = jnp.maximum(x_ref[...].astype(jnp.float32) * s1_ref[...] + b1_ref[...],
                    0.0)
    acc_ref[...] += jnp.dot(a.astype(jnp.bfloat16), w_ref[...],
                            preferred_element_type=jnp.float32)

    @pl.when(pl.program_id(1) == pl.num_programs(1) - 1)
    def _():
        y = acc_ref[...] + bias_ref[...]
        o_ref[...] = (1.0 / (1.0 + jnp.exp(-y))).astype(o_ref.dtype)


_MM_KERNELS = {
    "pre": _k_pre,
    "post": _k_post,
    "pre_post": _k_pre_post,
    "classifier": _k_classifier,
}


def _k_conv3x3(x_ref, w_ref, o_ref, acc_ref, *, wp, m_out):
    # 3x3 / stride 1 / pad 1 conv on a flattened zero-padded image slab.
    # x_ref : (Min, C)  f32   -- rows are the padded (Hp*Wp) grid (+ tail pad)
    # w_ref : (9, C, Cout) bf16 (offset-major weight matrices)
    # o_ref : (Mout, Cout) bf16 -- conv result at every padded grid position
    acc_ref[...] = jnp.zeros_like(acc_ref)
    for idx in range(9):
        di, dj = idx // 3, idx % 3
        shift = di * wp + dj                         # static sublane offset
        xs = x_ref[pl.ds(shift, m_out), :].astype(jnp.bfloat16)
        acc_ref[...] += jnp.dot(xs, w_ref[idx],
                                preferred_element_type=jnp.float32)
    o_ref[...] = acc_ref[...].astype(o_ref.dtype)


def _k_pool_max(p_ref, o_ref):
    # p: (P, TM, C) window slabs -> elementwise max over windows
    o_ref[...] = jnp.max(p_ref[...], axis=0).astype(o_ref.dtype)


def _k_pool_mean(p_ref, o_ref):
    o_ref[...] = jnp.mean(p_ref[...].astype(jnp.float32),
                          axis=0).astype(o_ref.dtype)


_POOL_KERNELS = {"max": _k_pool_max, "mean": _k_pool_mean}


# ------------------------- pallas_call constructors --------------------------
def _pick_tm(m):
    if m > 512:
        return 512
    if m > 256:
        return 256
    return _rup(m, 16)          # bf16 sublane tile


def _pick_tk(kp):
    q = kp // 128
    d = max(dd for dd in (4, 3, 2, 1) if q % dd == 0)
    return 128 * d


@functools.lru_cache(maxsize=None)
def _matmul_call(kind, mp, kp, np_, tm, tk, out_dtype):
    gm, gk = mp // tm, kp // tk

    x_spec = pl.BlockSpec((tm, tk), lambda i, j: (i, j))
    w_spec = pl.BlockSpec((tk, np_), lambda i, j: (j, 0))
    vk_spec = pl.BlockSpec((1, tk), lambda i, j: (0, j))   # per-K row vectors
    vn_spec = pl.BlockSpec((1, np_), lambda i, j: (0, 0))  # per-N row vectors
    o_spec = pl.BlockSpec((tm, np_), lambda i, j: (i, 0))

    in_specs = [x_spec]
    if kind in ("pre", "pre_post", "classifier"):
        in_specs += [vk_spec, vk_spec]
    in_specs.append(w_spec)
    if kind in ("post", "pre_post"):
        in_specs += [vn_spec, vn_spec]
    if kind == "classifier":
        in_specs.append(vn_spec)

    itemsize = jnp.dtype(out_dtype).itemsize
    cost = pl.CostEstimate(
        flops=2 * mp * kp * np_,
        transcendentals=mp * np_ if kind == "classifier" else 0,
        bytes_accessed=mp * kp * 2 + kp * np_ * 2 + mp * np_ * itemsize)

    return jax.jit(pl.pallas_call(
        _MM_KERNELS[kind],
        grid=(gm, gk),
        in_specs=in_specs,
        out_specs=o_spec,
        out_shape=jax.ShapeDtypeStruct((mp, np_), out_dtype),
        scratch_shapes=[pltpu.VMEM((tm, np_), jnp.float32)],
        compiler_params=pltpu.CompilerParams(
            dimension_semantics=("parallel", "arbitrary")),
        cost_estimate=cost,
    ))


@functools.lru_cache(maxsize=None)
def _conv3x3_call(n, min_rows, mout_rows, c, c_out, wp):
    kernel = functools.partial(_k_conv3x3, wp=wp, m_out=mout_rows)
    cost = pl.CostEstimate(
        flops=2 * n * mout_rows * c * c_out * 9,
        transcendentals=0,
        bytes_accessed=n * (min_rows * c * 4 + mout_rows * c_out * 2)
        + 9 * c * c_out * 2)
    return jax.jit(pl.pallas_call(
        kernel,
        grid=(n,),
        in_specs=[pl.BlockSpec((None, min_rows, c), lambda i: (i, 0, 0)),
                  pl.BlockSpec((9, c, c_out), lambda i: (0, 0, 0))],
        out_specs=pl.BlockSpec((None, mout_rows, c_out), lambda i: (i, 0, 0)),
        out_shape=jax.ShapeDtypeStruct((n, mout_rows, c_out), jnp.bfloat16),
        scratch_shapes=[pltpu.VMEM((mout_rows, c_out), jnp.float32)],
        compiler_params=pltpu.CompilerParams(
            dimension_semantics=("parallel",)),
        cost_estimate=cost,
    ))


@functools.lru_cache(maxsize=None)
def _pool_call(kind, p, mp, c, tm, dtype_name):
    dtype = jnp.dtype(dtype_name)
    return jax.jit(pl.pallas_call(
        _POOL_KERNELS[kind],
        grid=(mp // tm,),
        in_specs=[pl.BlockSpec((p, tm, c), lambda i: (0, i, 0))],
        out_specs=pl.BlockSpec((tm, c), lambda i: (i, 0)),
        out_shape=jax.ShapeDtypeStruct((mp, c), dtype),
        compiler_params=pltpu.CompilerParams(
            dimension_semantics=("parallel",)),
    ))


# ------------------------------- JAX glue ----------------------------------
def _bn_affine(bn):
    gamma, beta, mean, var = bn
    scale = gamma / jnp.sqrt(var + BN_EPS)
    bias = beta - mean * scale
    return scale, bias


def _fused_matmul(kind, x2d, w, pre_s=None, pre_b=None,
                  post_s=None, post_b=None, lin_b=None,
                  out_dtype=jnp.bfloat16):
    m, k = x2d.shape
    k2, n = w.shape
    assert k2 == k
    kp = _rup(k, 128)
    np_ = _rup(n, 128)
    tm = _pick_tm(m)
    mp = _rup(m, tm)
    tk = _pick_tk(kp)

    args = [_pad2(x2d.astype(jnp.bfloat16), mp, kp)]
    if kind in ("pre", "pre_post", "classifier"):
        args += [_pad2(pre_s.reshape(1, k).astype(jnp.float32), 1, kp),
                 _pad2(pre_b.reshape(1, k).astype(jnp.float32), 1, kp)]
    args.append(_pad2(w.astype(jnp.bfloat16), kp, np_))
    if kind in ("post", "pre_post"):
        args += [_pad2(post_s.reshape(1, n).astype(jnp.float32), 1, np_),
                 _pad2(post_b.reshape(1, n).astype(jnp.float32), 1, np_)]
    if kind == "classifier":
        args.append(_pad2(lin_b.reshape(1, n).astype(jnp.float32), 1, np_))

    out = _matmul_call(kind, mp, kp, np_, tm, tk, out_dtype)(*args)
    return out[:m, :n]


def _conv3x3(x_nhwc_f32, w):
    """3x3 conv, stride 1, pad 1, no bias.  x: (N,H,W,C) f32, w: (O,C,3,3)."""
    n, h, wd, c = x_nhwc_f32.shape
    hp, wp = h + 2, wd + 2
    mout = hp * wp
    mout_p = _rup(mout, 8)
    min_rows = _rup(mout_p + 2 * wp + 2, 8)
    c_out = w.shape[0]

    xp = jnp.pad(x_nhwc_f32, ((0, 0), (1, 1), (1, 1), (0, 0)))
    xflat = xp.reshape(n, mout, c)
    xflat = jnp.pad(xflat, ((0, 0), (0, min_rows - mout), (0, 0)))

    wmat = w.transpose(2, 3, 1, 0).reshape(9, c, c_out).astype(jnp.bfloat16)

    out = _conv3x3_call(n, min_rows, mout_p, c, c_out, wp)(
        xflat.astype(jnp.float32), wmat)
    out = out[:, :mout, :].reshape(n, hp, wp, c_out)
    return out[:, :h, :wd, :]                      # valid output positions


def _extract_windows_nhwc(x, kh, kw, stride, pad, pad_value):
    """(N,H,W,C) -> (kh*kw, N*Ho*Wo, C) window slabs (channels-last)."""
    n, h, w, c = x.shape
    ho = (h + 2 * pad - kh) // stride + 1
    wo = (w + 2 * pad - kw) // stride + 1
    xp = jnp.pad(x, ((0, 0), (pad, pad), (pad, pad), (0, 0)),
                 constant_values=pad_value)
    wins = []
    for i in range(kh):
        for j in range(kw):
            p = xp[:, i:i + (ho - 1) * stride + 1:stride,
                      j:j + (wo - 1) * stride + 1:stride, :]
            wins.append(p.reshape(n * ho * wo, c))
    return jnp.stack(wins, axis=0), ho, wo


def _im2col_nhwc(x, kh, kw, stride, pad):
    """(N,H,W,C) -> ((N*Ho*Wo, kh*kw*C), Ho, Wo); column order (kh, kw, c)."""
    n, h, w, c = x.shape
    ho = (h + 2 * pad - kh) // stride + 1
    wo = (w + 2 * pad - kw) // stride + 1
    xp = jnp.pad(x, ((0, 0), (pad, pad), (pad, pad), (0, 0)))
    cols = []
    for i in range(kh):
        for j in range(kw):
            cols.append(xp[:, i:i + (ho - 1) * stride + 1:stride,
                              j:j + (wo - 1) * stride + 1:stride, :])
    col = jnp.concatenate(cols, axis=-1)
    return col.reshape(n * ho * wo, kh * kw * c), ho, wo


def _pool(kind, x, kh, kw, stride, pad, pad_value):
    n, h, w, c = x.shape
    wins, ho, wo = _extract_windows_nhwc(x, kh, kw, stride, pad, pad_value)
    p, m, _ = wins.shape
    tm = 512 if m > 512 else _rup(m, 8)
    mp = _rup(m, tm)
    fill = pad_value if kind == "max" else 0.0
    winsp = jnp.pad(wins, ((0, 0), (0, mp - m), (0, 0)),
                    constant_values=fill)
    out = _pool_call(kind, p, mp, c, tm, str(x.dtype))(winsp)[:m]
    return out.reshape(n, ho, wo, c)


# --------------------------- parameter creation -----------------------------
class _KeyGen:
    def __init__(self, seed):
        self.key = jax.random.PRNGKey(seed)

    def __call__(self):
        self.key, k = jax.random.split(self.key)
        return k


def _conv_w(kg, out_c, in_c, kh, kw):
    std = (2.0 / (in_c * kh * kw)) ** 0.5          # kaiming_normal (fan_in)
    return std * jax.random.normal(kg(), (out_c, in_c, kh, kw), jnp.float32)


def _bn_p(kg, c):
    gamma = 1.0 + 0.1 * jax.random.normal(kg(), (c,), jnp.float32)
    beta = 0.1 * jax.random.normal(kg(), (c,), jnp.float32)
    mean = 0.1 * jax.random.normal(kg(), (c,), jnp.float32)
    var = 1.0 + 0.2 * jax.random.uniform(kg(), (c,), jnp.float32)
    return (gamma, beta, mean, var)


def init_densenet169_params(class_count, seed=0):
    kg = _KeyGen(seed)
    p = {"conv0": _conv_w(kg, NUM_INIT_FEATURES, 3, 7, 7),
         "norm0": _bn_p(kg, NUM_INIT_FEATURES)}
    nf = NUM_INIT_FEATURES
    blocks = []
    for bi, n_layers in enumerate(BLOCK_CONFIG):
        layers = []
        for li in range(n_layers):
            in_f = nf + li * GROWTH
            layers.append(dict(
                norm1=_bn_p(kg, in_f),
                conv1=_conv_w(kg, BN_SIZE * GROWTH, in_f, 1, 1),
                norm2=_bn_p(kg, BN_SIZE * GROWTH),
                conv2=_conv_w(kg, GROWTH, BN_SIZE * GROWTH, 3, 3),
            ))
        blocks.append(layers)
        nf = nf + n_layers * GROWTH
        if bi != len(BLOCK_CONFIG) - 1:
            p[f"trans{bi + 1}"] = dict(norm=_bn_p(kg, nf),
                                       conv=_conv_w(kg, nf // 2, nf, 1, 1))
            nf = nf // 2
    p["blocks"] = blocks
    p["norm5"] = _bn_p(kg, nf)                    # nf == 1664 for densenet169
    bound = 1.0 / (nf ** 0.5)                     # PyTorch Linear default init
    p["cls_w"] = jax.random.uniform(kg(), (class_count, nf), jnp.float32,
                                    -bound, bound)
    p["cls_b"] = jax.random.uniform(kg(), (class_count,), jnp.float32,
                                    -bound, bound)
    p["num_features"] = nf
    return p


# --------------------------------- forward ----------------------------------
def _dense_layer(lp, x):
    """x: (N,H,W,Cin) bf16 -> (N,H,W,Cin+GROWTH) bf16."""
    n, h, w, cin = x.shape
    m = x.reshape(n * h * w, cin)
    s1, b1 = _bn_affine(lp["norm1"])
    s2, b2 = _bn_affine(lp["norm2"])
    w1 = lp["conv1"].reshape(lp["conv1"].shape[0], -1).T        # (Cin, 128)
    # bottleneck: relu(norm2(conv1(relu(norm1(x)))))   -- one fused kernel
    bneck = _fused_matmul("pre_post", m, w1, pre_s=s1, pre_b=b1,
                          post_s=s2, post_b=b2, out_dtype=jnp.float32)
    bneck = bneck.reshape(n, h, w, BN_SIZE * GROWTH)
    # 3x3 conv, padding=1 (input already activated -> zero padding is correct)
    new_feat = _conv3x3(bneck, lp["conv2"])                     # (N,H,W,32)
    return jnp.concatenate([x, new_feat], axis=-1)              # lane concat


def _transition(tp, x):
    n, h, w, c = x.shape
    s, b = _bn_affine(tp["norm"])
    wt = tp["conv"].reshape(tp["conv"].shape[0], -1).T
    y = _fused_matmul("pre", x.reshape(n * h * w, c), wt, pre_s=s, pre_b=b)
    y = y.reshape(n, h, w, c // 2)
    return _pool("mean", y, 2, 2, 2, 0, pad_value=0.0)


def densenet169_forward(params, x):
    """x: (N, 3, H, W) float32 (NCHW, like PyTorch)."""
    n = x.shape[0]
    x = x.transpose(0, 2, 3, 1)                   # one-time NCHW -> NHWC
    # Stem: conv0(7x7,s2,p3) -> norm0 -> relu -> maxpool(3x3,s2,p1)
    col, ho, wo = _im2col_nhwc(x, 7, 7, 2, 3)
    w0 = params["conv0"].transpose(2, 3, 1, 0).reshape(-1, NUM_INIT_FEATURES)
    s0, b0 = _bn_affine(params["norm0"])
    y = _fused_matmul("post", col, w0, post_s=s0, post_b=b0)
    x = y.reshape(n, ho, wo, NUM_INIT_FEATURES)
    x = _pool("max", x, 3, 3, 2, 1, pad_value=NEG_BIG)

    # Dense blocks + transitions
    for bi, layers in enumerate(params["blocks"]):
        for lp in layers:
            x = _dense_layer(lp, x)
        if bi != len(BLOCK_CONFIG) - 1:
            x = _transition(params[f"trans{bi + 1}"], x)

    # norm5 -> relu -> adaptive_avg_pool2d((1,1)) -> flatten -> Linear -> Sigmoid
    n, h, w, c = x.shape
    s5, b5 = _bn_affine(params["norm5"])
    wc = params["cls_w"].T
    if h * w == 1:
        feat = x.reshape(n, c)
        out = _fused_matmul("classifier", feat, wc, pre_s=s5, pre_b=b5,
                            lin_b=params["cls_b"], out_dtype=jnp.float32)
    else:
        # TODO(synk): for spatial > 1x1 the pre-pool BN+ReLU stays in XLA glue.
        a = jnp.maximum(x.astype(jnp.float32) * s5 + b5, 0.0)
        feat = a.mean(axis=(1, 2))
        out = _fused_matmul("classifier", feat, wc,
                            pre_s=jnp.ones((c,), jnp.float32),
                            pre_b=jnp.zeros((c,), jnp.float32),
                            lin_b=params["cls_b"], out_dtype=jnp.float32)
    return out


# ----------------------------------- main ------------------------------------
if __name__ == "__main__":
    key = jax.random.PRNGKey(0)
    x = jax.random.normal(key, (2, 3, 32, 32), jnp.float32)   # NCHW input
    params = init_densenet169_params(CLASS_COUNT, seed=0)

    out = densenet169_forward(params, x)
    out = jax.block_until_ready(out)

    assert out.shape == (2, CLASS_COUNT), out.shape
    assert bool(jnp.all(jnp.isfinite(out)))
    assert bool(jnp.all((out >= 0.0) & (out <= 1.0)))   # sigmoid output
    print("KERNEL_OK")
</pallas_src>

<mosaic_0001>
module attributes {stable_mosaic.version = 11 : i64} {
  func.func @_k_post(%arg0: i32, %arg1: i32, %arg2: memref<256x256xbf16, #tpu.memory_space<vmem>>, %arg3: memref<256x128xbf16, #tpu.memory_space<vmem>>, %arg4: memref<1x128xf32, #tpu.memory_space<vmem>>, %arg5: memref<1x128xf32, #tpu.memory_space<vmem>>, %arg6: memref<256x128xbf16, #tpu.memory_space<vmem>>, %arg7: memref<256x128xf32, #tpu.memory_space<vmem>>) attributes {dimension_semantics = [#tpu.dimension_semantics<parallel>, #tpu.dimension_semantics<arbitrary>], iteration_bounds = array<i64: 2, 1>, scalar_prefetch = 0 : i64, scratch_operands = 1 : i64, tpu.core_type = #tpu.core_type<tc>, window_params = [{transform_indices = @transform_0, window_bounds = array<i64: 256, 256>}, {transform_indices = @transform_1, window_bounds = array<i64: 256, 128>}, {pipeline_mode = #tpu.pipeline_mode<synchronous>, transform_indices = @transform_2, window_bounds = array<i64: 1, 128>}, {pipeline_mode = #tpu.pipeline_mode<synchronous>, transform_indices = @transform_3, window_bounds = array<i64: 1, 128>}, {transform_indices = @transform_4, window_bounds = array<i64: 256, 128>}]} {
    %c0_i32 = arith.constant 0 : i32
    %0 = arith.cmpi eq, %arg1, %c0_i32 : i32
    %1 = arith.extui %0 : i1 to i32
    %c0_i32_0 = arith.constant 0 : i32
    %2 = arith.cmpi ne, %1, %c0_i32_0 : i32
    scf.if %2 {
      %cst_10 = arith.constant 0.000000e+00 : f32
      %12 = vector.broadcast %cst_10 : f32 to vector<256x128xf32>
      %c0_11 = arith.constant 0 : index
      %c0_12 = arith.constant 0 : index
      %13 = vector.load %arg7[%c0_11, %c0_12] : memref<256x128xf32, #tpu.memory_space<vmem>>, vector<256x128xf32>
      tpu.vector_store %arg7[%c0_11, %c0_12], %12 {strides = array<i32>} : memref<256x128xf32, #tpu.memory_space<vmem>>, vector<256x128xf32>,
    } else {
    }
    %c0 = arith.constant 0 : index
    %c0_1 = arith.constant 0 : index
    %3 = vector.load %arg7[%c0, %c0_1] : memref<256x128xf32, #tpu.memory_space<vmem>>, vector<256x128xf32>
    %c0_2 = arith.constant 0 : index
    %c0_3 = arith.constant 0 : index
    %4 = vector.load %arg2[%c0_2, %c0_3] : memref<256x256xbf16, #tpu.memory_space<vmem>>, vector<256x256xbf16>
    %c0_4 = arith.constant 0 : index
    %c0_5 = arith.constant 0 : index
    %5 = vector.load %arg3[%c0_4, %c0_5] : memref<256x128xbf16, #tpu.memory_space<vmem>>, vector<256x128xbf16>
    %cst = arith.constant dense<0.000000e+00> : vector<256x128xf32>
    %6 = tpu.matmul %4, %5, %cst {dimension_numbers = #tpu.dot_dimension_numbers<[1], [0], [0], [1], [0, 0, 1, 1], [], []>} : vector<256x256xbf16>, vector<256x128xbf16>, vector<256x128xf32> -> vector<256x128xf32>
    %7 = arith.addf %3, %6 : vector<256x128xf32>
    %c0_6 = arith.constant 0 : index
    %c0_7 = arith.constant 0 : index
    %8 = vector.load %arg7[%c0_6, %c0_7] : memref<256x128xf32, #tpu.memory_space<vmem>>, vector<256x128xf32>
    tpu.vector_store %arg7[%c0_6, %c0_7], %7 {strides = array<i32>} : memref<256x128xf32, #tpu.memory_space<vmem>>, vector<256x128xf32>,
    %c0_i32_8 = arith.constant 0 : i32
    %9 = arith.cmpi eq, %arg1, %c0_i32_8 : i32
    %10 = arith.extui %9 : i1 to i32
    %c0_i32_9 = arith.constant 0 : i32
    %11 = arith.cmpi ne, %10, %c0_i32_9 : i32
    scf.if %11 {
      %c0_10 = arith.constant 0 : index
      %c0_11 = arith.constant 0 : index
      %12 = vector.load %arg7[%c0_10, %c0_11] : memref<256x128xf32, #tpu.memory_space<vmem>>, vector<256x128xf32>
      %c0_12 = arith.constant 0 : index
      %c0_13 = arith.constant 0 : index
      %13 = vector.load %arg4[%c0_12, %c0_13] : memref<1x128xf32, #tpu.memory_space<vmem>>, vector<1x128xf32>
      %14 = vector.broadcast %13 : vector<1x128xf32> to vector<256x128xf32>
      %15 = arith.mulf %12, %14 : vector<256x128xf32>
      %c0_14 = arith.constant 0 : index
      %c0_15 = arith.constant 0 : index
      %16 = vector.load %arg5[%c0_14, %c0_15] : memref<1x128xf32, #tpu.memory_space<vmem>>, vector<1x128xf32>
      %17 = vector.broadcast %16 : vector<1x128xf32> to vector<256x128xf32>
      %18 = arith.addf %15, %17 : vector<256x128xf32>
      %cst_16 = arith.constant 0.000000e+00 : f32
      %19 = vector.broadcast %cst_16 : f32 to vector<256x128xf32>
      %20 = arith.maximumf %18, %19 : vector<256x128xf32>
      %21 = arith.truncf %20 : vector<256x128xf32> to vector<256x128xbf16>
      %c0_17 = arith.constant 0 : index
      %c0_18 = arith.constant 0 : index
      %22 = vector.load %arg6[%c0_17, %c0_18] : memref<256x128xbf16, #tpu.memory_space<vmem>>, vector<256x128xbf16>
      tpu.vector_store %arg6[%c0_17, %c0_18], %21 {strides = array<i32>} : memref<256x128xbf16, #tpu.memory_space<vmem>>, vector<256x128xbf16>,
    } else {
    }
    return
  }
  func.func @transform_0(%arg0: i32, %arg1: i32) -> (i32, i32) {
    %c0_i32 = arith.constant 0 : i32
    return %arg0, %arg1 : i32, i32
  }
  func.func @transform_1(%arg0: i32, %arg1: i32) -> (i32, i32) {
    %c0_i32 = arith.constant 0 : i32
    %c0_i32_0 = arith.constant 0 : i32
    return %arg1, %c0_i32 : i32, i32
  }
  func.func @transform_2(%arg0: i32, %arg1: i32) -> (i32, i32) {
    %c0_i32 = arith.constant 0 : i32
    %c0_i32_0 = arith.constant 0 : i32
    %c0_i32_1 = arith.constant 0 : i32
    return %c0_i32, %c0_i32_0 : i32, i32
  }
  func.func @transform_3(%arg0: i32, %arg1: i32) -> (i32, i32) {
    %c0_i32 = arith.constant 0 : i32
    %c0_i32_0 = arith.constant 0 : i32
    %c0_i32_1 = arith.constant 0 : i32
    return %c0_i32, %c0_i32_0 : i32, i32
  }
  func.func @transform_4(%arg0: i32, %arg1: i32) -> (i32, i32) {
    %c0_i32 = arith.constant 0 : i32
    %c0_i32_0 = arith.constant 0 : i32
    return %arg0, %c0_i32 : i32, i32
  }
}

</mosaic_0001>

<bundles_post_ra>
// kernel: tpu_custom_call.1
= control target key start
LH: loop header
LB: loop body
LE: loop exit
PB: predicated region body
PF: predicated region fallthrough
CT: control target
= control target key end

     0   :  { %s2151_s0 = inlined_call_operand.hbm [shape: bf16[512,256], index: 0, kind: input, shape index: {}]   ;;  %s2152_s1 = inlined_call_operand.hbm [shape: bf16[256,128], index: 1, kind: input, shape index: {}]   ;;  %s2153_s2 = inlined_call_operand.vmem [shape: f32[1,128], index: 2, kind: input, shape index: {}]   ;;  %s2154_s3 = inlined_call_operand.vmem [shape: f32[1,128], index: 3, kind: input, shape index: {}]   ;;  %s2155_s4 = inlined_call_operand.hbm [shape: bf16[512,128], index: 4, kind: output, shape index: {}]  }
   0x1   :  { %2157 = sst [smem:[#allocation13_spill]] %s2152_s1 }
   0x2   :  { %9 = vsyncpa [#allocation4], 0 }
   0x3   :  { %11 = vsyncpa [#allocation4 + $0x1], 0 }
   0x4   :  { %12 = vsyncpa [#allocation7], 0 }
   0x5   :  { %13 = vsyncpa [#allocation5], 0 }
   0x6   :  { %15 = vsyncpa [#allocation5 + $0x1], 0  ;;  %s1842_s15 = smov 0   ;;  %s1844_s16 = smov 0  }
   0x7   :  { %s1846_s17 = smov 0   ;;  %s1848_s18 = smov 0  }
   0x8   :  { %s1850_s19 = smov 0   ;;  %s1852_s20 = smov 0  }
   0x9 LB: > { %s1209_s21 = sadd.s32 4294967295, %s1808_s20   ;;  %s1210_s22 = sadd.s32 4294967294, %s1808_s20   ;;  %s1808_s20 = sphi %s1852_s20, %s21_s20   ;;  %s1804_s19 = sphi %s1850_s19, %s2172_s19   ;;  %s1800_s18 = sphi %s1848_s18, %s2171_s18   ;;  %s1796_s17 = sphi %s1846_s17, %s2170_s17   ;;  %s1792_s16 = sphi %s1844_s16, %s2169_s16   ;;  %s1788_s15 = sphi %s1842_s15, %s2168_s15  }
   0xa   : > { %p55_p0 = scmp.ne.s32.totalorder %s1792_s16, %s1788_s15  ;;  %p1876_p1 = scmp.eq.s32.totalorder %s1209_s21, 0 }
   0xb   : > { %p1880_p2 = scmp.eq.s32.totalorder %s1209_s21, 1  ;;  %p153_p3 = scmp.eq.s32.totalorder %s1210_s22, 1 }
   0xc   : > { %p1886_p4 = por %p1876_p1, %p55_p0  ;;  %p1211_p5 = scmp.ge.s32.totalorder %s1808_s20, 1 }
   0xd   : > { %p1891_p6 = por %p153_p3, %p55_p0  ;;  %p160_p7 = scmp.lt.s32.totalorder %s1808_s20, 3 }
   0xe   : > { %s2162_s1 = sld [smem:[#allocation13_spill]]  ;;  %s1810_s5 = smov [#allocation6]  }
   0xf   : > { %p1899_p8 = pnand %p1211_p5, %p160_p7  ;;  %s176_s6 = sshll.u32 %s1810_s5, 4  ;;  %s177_s6 = int_to_ptr.vmem [resolvable:$true] %s176_s6 }
  0x10   : > { %p1213_p11 = scmp.ge.s32.totalorder %s1808_s20, 2  ;;  %s1811_s7 = smov 64  }
  0x11   : > { %p1589_p9 = pneg %p1899_p8  ;;  %s1812_s8 = smov 4  }
  0x12   : > { %s33_s9 = sadd.s32 1, %s1804_s19  ;;  %s42_s10 = sadd.s32 1, %s1796_s17 }
  0x13   : > { %p1590_p10 = pnand %p1589_p9, %p1876_p1  ;;  %p35_p12 = scmp.ge.s32.totalorder %s33_s9, 2 }
  0x14   : > { %s174_s29 = sshll.u32 %s2162_s1, 4  ;;  %p49_p13 = scmp.ne.s32.totalorder %s1796_s17, %s1792_s16  ;;  %s175_s29 = int_to_ptr.hbm [resolvable:$true] %s174_s29 }
  0x15   : > { %1592 = dma.hbm_to_vmem [thread:$0]  (!%p1590_p10), %s175_s29, 2048, %s177_s6, [#allocation7], %s1811_s7, %s1811_s7, %s1812_s8  }
  0x16   : > { %p50_p0 = scmp.eq.s32.totalorder %s1808_s20, 0  ;;  %s2174_s9 = smov (%p35_p12, %s33_s9), 0 }
  0x17   : > { %2164 = sst [smem:[#allocation12_spill]] %s2174_s9  ;;  %p1921_p5 = por %p1880_p2, %p49_p13 }
  0x18   : > { %p1915_p3 = por %p50_p0, %p49_p13  ;;  %s37_s13 = ssub.s32 %s1804_s19, %s2174_s9 }
  0x19   : > { %p1602_p7 = scmp.lt.s32.totalorder %s1808_s20, 2  ;;  %p40_p9 = scmp.eq.s32.totalorder %s37_s13, 0 }
  0x1a   : > { %s196_s14 = sand.u32 1, %s1796_s17   ;;  %s1420_s27 = sshll.u32 %s1804_s19, 8 }
  0x1b   : > { %s1214_s21 = sshll.u32 %s196_s14, 8  ;;  %s208_s5 = scalar_lea.hbm %s2151_s0, %s1420_s27 }
  0x1c   : > { %s1930_s22 = scalar_select %p40_p9, %s1796_s17, %s42_s10  }
  0x1d   : > { %s200_s6 = scalar_lea.vmem [#allocation3], %s1214_s21  ;;  %s209_s24 = sshll.u32 %s208_s5, 4  ;;  %s210_s24 = int_to_ptr.hbm [resolvable:$true] %s209_s24 }
  0x1e   : > { %s211_s7 = sshll.u32 %s200_s6, 4  ;;  %p1594_p2 = pnand %p1602_p7, %p1915_p3  ;;  %s212_s7 = int_to_ptr.vmem [resolvable:$true] %s211_s7 }
  0x1f   : > { %s197_s8 = scalar_lea.sflag [#allocation4], %s196_s14  ;;  %s1813_s1 = smov 128  }
  0x20   : > { %s1814_s9 = smov 8   ;;  %223 = sbr.rel (%p1899_p8) target bundleno = 339 (0x153), region = 36 }
  0x21   : > { %1596 = dma.hbm_to_vmem [thread:$0]  (!%p1594_p2), %s210_s24, 4096, %s212_s7, %s197_s8, %s1813_s1, %s1813_s1, %s1814_s9  }
  0x22   : > { %s1941_s10 = sand.u32 (!%p1899_p8), 1, %s1792_s16  }
  0x23   : > { %s1219_s13 = sshll.u32 (!%p1899_p8), %s1941_s10, 8  ;;  %s226_s21 = scalar_lea.sflag (!%p1899_p8), [#allocation4], %s1941_s10 }
  0x24   : > { %s1945_s27 = scalar_lea.vmem (!%p1899_p8), [#allocation3], %s1219_s13 }
  0x25   : > { %1775 = dma.done.wait (%p1886_p4), %s226_s21, 4096  }
  0x26   : > { %1777 = vsyncadd (%p1886_p4), %s226_s21, 4294963200 }
  0x27   : > { %1779 = dma.done.wait (%p1876_p1), [#allocation7], 2048  }
  0x28   : > { %1781 = vsyncadd (%p1876_p1), [#allocation7], 4294965248  ;;  %v1460_v0 = vld [vmem:[#allocation6 + $0x38] sm:$0xff]  ;;  %v1459_v2 = vld [vmem:[#allocation6 + $0x30] sm:$0xff]  ;;  %s1221_s9 = sshll.u32 %s1941_s10, 7  ;;  %s1469_s14 = sshll.u32 %s1800_s18, 7 }
  0x29   : > { %v1468_v1 = vld [vmem:[#allocation6 + $0x78] sm:$0xff]  ;;  %652 = vmatpush.bf16.msra.mxu0 %v1460_v0  ;;  %1565 = vmatpush.bf16.msra.mxu2 %v1460_v0  ;;  %v1467_v3 = vld [vmem:[#allocation6 + $0x70] sm:$0xff]  ;;  %v1458_v4 = vld [vmem:[#allocation6 + $0x28] sm:$0xff]  ;;  %s2037_s11 = scalar_lea.vmem [#allocation8], %s1221_s9  ;;  %s1109_s5 = scalar_lea.hbm %s2155_s4, %s1469_s14 }
  0x2a   : > { %741 = vmatpush.bf16.msra.mxu1 %v1468_v1  ;;  %1573 = vmatpush.bf16.msra.mxu3 %v1468_v1  ;;  %v1466_v5 = vld [vmem:[#allocation6 + $0x68] sm:$0xff]  ;;  %v1457_v6 = vld [vmem:[#allocation6 + $0x20] sm:$0xff]  ;;  %v1456_v8 = vld [vmem:[#allocation6 + $0x18] sm:$0xff]  ;;  %s1110_s18 = sshll.u32 %s2037_s11, 4  ;;  %s1112_s6 = sshll.u32 %s1109_s5, 4  ;;  %s1111_s18 = int_to_ptr.vmem [resolvable:$true] %s1110_s18  ;;  %s1113_s6 = int_to_ptr.hbm [resolvable:$true] %s1112_s6 }
  0x2b   : > { %v1465_v7 = vld [vmem:[#allocation6 + $0x60] sm:$0xff]  ;;  %v1464_v9 = vld [vmem:[#allocation6 + $0x58] sm:$0xff]  ;;  %v1455_v10 = vld [vmem:[#allocation6 + $0x10] sm:$0xff]  ;;  %s1098_s7 = scalar_lea.sflag [#allocation5], %s1941_s10  ;;  %s1736_s24 = sshra.s32 %s1113_s6, 4  ;;  %s1737_s24 = int_to_ptr.hbm [resolvable:$true] %s1736_s24 }
  0x2c   : > { %v1463_v11 = vld [vmem:[#allocation6 + $0x50] sm:$0xff]  ;;  %v1454_v12 = vld [vmem:[#allocation6 + $0x8] sm:$0xff]  ;;  %v1453_v14 = vld [vmem:[#allocation6] sm:$0xff]  ;;  %s1738_s8 = scalar_lea.hbm %s1737_s24, 128  ;;  %p1743_p10 = scmp.lt.s32.totalorder %s1737_s24, %s2155_s4 }
  0x2d   : > { %653 = vmatpush.bf16.msra.mxu0 %v1459_v2  ;;  %1566 = vmatpush.bf16.msra.mxu2 %v1459_v2  ;;  %v1462_v13 = vld [vmem:[#allocation6 + $0x48] sm:$0xff]  ;;  %v1461_v15 = vld [vmem:[#allocation6 + $0x40] sm:$0xff]  ;;  %v1232_v28 = vld [vmem:[%s1945_s27 + $0x10] sm:$0xf]  ;;  %p1739_p1 = scmp.ne.s32.totalorder %s1737_s24, %s1738_s8 }
  0x2e   : > { %742 = vmatpush.bf16.msra.mxu1 %v1467_v3  ;;  %1574 = vmatpush.bf16.msra.mxu3 %v1467_v3  ;;  %v1224_v16 = vld [vmem:[%s1945_s27] sm:$0xf]  ;;  %v1422_v17 = vld [vmem:[%s1945_s27 + $0x4] sm:$0xf0]  ;;  %v1421_v20 = vld [vmem:[%s1945_s27 + $0x4] sm:$0xf] }
  0x2f   : > { %v1288_v18 = vld [vmem:[%s1945_s27 + $0x80] sm:$0xf]  ;;  %v1438_v19 = vld [vmem:[%s1945_s27 + $0x84] sm:$0xf0]  ;;  %v1226_v21 = vld [vmem:[%s1945_s27 + $0x8] sm:$0xf0]  ;;  %v1225_v24 = vor.u32 %v1422_v17, %v1224_v16  ;;  %p1740_p4 = pnand %p1739_p1, %p1921_p5 }
  0x30   : > { %v1437_v22 = vld [vmem:[%s1945_s27 + $0x84] sm:$0xf]  ;;  %v1290_v23 = vld [vmem:[%s1945_s27 + $0x88] sm:$0xf0]  ;;  %v1289_v25 = vor.u32 %v1438_v19, %v1288_v18  ;;  %v1229_v26 = vor.u32 %v1421_v20, %v1226_v21  ;;  %v1424_v29 = vld [vmem:[%s1945_s27 + $0x14] sm:$0xf0] }
  0x31   : > { %654 = vmatpush.bf16.msra.mxu0 %v1458_v4  ;;  %1567 = vmatpush.bf16.msra.mxu2 %v1458_v4  ;;  %v1293_v27 = vor.u32 %v1437_v22, %v1290_v23  ;;  %v1296_v30 = vld [vmem:[%s1945_s27 + $0x90] sm:$0xf]  ;;  %v1440_v31 = vld [vmem:[%s1945_s27 + $0x94] sm:$0xf0]  ;;  %v1423_v32 = vld [vmem:[%s1945_s27 + $0x14] sm:$0xf]  ;;  %v1233_v36 = vor.u32 %v1424_v29, %v1232_v28  ;;  %p1741_p8 = pneg %p1740_p4 }
  0x32   : > { %743 = vmatpush.bf16.msra.mxu1 %v1466_v5  ;;  %1575 = vmatpush.bf16.msra.mxu3 %v1466_v5  ;;  %v1234_v33 = vld [vmem:[%s1945_s27 + $0x18] sm:$0xf0]  ;;  %v1439_v34 = vld [vmem:[%s1945_s27 + $0x94] sm:$0xf]  ;;  %v1297_v37 = vor.u32 %v1440_v31, %v1296_v30  ;;  %v1240_v40 = vld [vmem:[%s1945_s27 + $0x20] sm:$0xf] }
  0x33   : > { %v1298_v35 = vld [vmem:[%s1945_s27 + $0x98] sm:$0xf0]  ;;  %v1237_v38 = vor.u32 %v1423_v32, %v1234_v33  ;;  %v1426_v41 = vld [vmem:[%s1945_s27 + $0x24] sm:$0xf0]  ;;  %v1304_v42 = vld [vmem:[%s1945_s27 + $0xa0] sm:$0xf] }
  0x34   : > { %v1301_v39 = vor.u32 %v1439_v34, %v1298_v35  ;;  %v1442_v43 = vld [vmem:[%s1945_s27 + $0xa4] sm:$0xf0]  ;;  %v1425_v44 = vld [vmem:[%s1945_s27 + $0x24] sm:$0xf]  ;;  %v1242_v45 = vld [vmem:[%s1945_s27 + $0x28] sm:$0xf0]  ;;  %v1241_v48 = vor.u32 %v1426_v41, %v1240_v40 }
  0x35   : > { %655 = vmatpush.bf16.msra.mxu0 %v1457_v6  ;;  %1568 = vmatpush.bf16.msra.mxu2 %v1457_v6  ;;  %v1441_v46 = vld [vmem:[%s1945_s27 + $0xa4] sm:$0xf]  ;;  %v1306_v47 = vld [vmem:[%s1945_s27 + $0xa8] sm:$0xf0]  ;;  %v1305_v49 = vor.u32 %v1442_v43, %v1304_v42  ;;  %v1245_v50 = vor.u32 %v1425_v44, %v1242_v45  ;;  %v1248_v52 = vld [vmem:[%s1945_s27 + $0x30] sm:$0xf] }
  0x36   : > { %744 = vmatpush.bf16.msra.mxu1 %v1465_v7  ;;  %1576 = vmatpush.bf16.msra.mxu3 %v1465_v7  ;;  %v1309_v51 = vor.u32 %v1441_v46, %v1306_v47  ;;  %v1428_v53 = vld [vmem:[%s1945_s27 + $0x34] sm:$0xf0]  ;;  %v1312_v54 = vld [vmem:[%s1945_s27 + $0xb0] sm:$0xf]  ;;  %v1427_v56 = vld [vmem:[%s1945_s27 + $0x34] sm:$0xf] }
  0x37   : > { %v1444_v55 = vld [vmem:[%s1945_s27 + $0xb4] sm:$0xf0]  ;;  %v1250_v57 = vld [vmem:[%s1945_s27 + $0x38] sm:$0xf0]  ;;  %v1443_v58 = vld [vmem:[%s1945_s27 + $0xb4] sm:$0xf]  ;;  %v1249_v60 = vor.u32 %v1428_v53, %v1248_v52 }
  0x38   : > { %v1314_v59 = vld [vmem:[%s1945_s27 + $0xb8] sm:$0xf0]  ;;  %v1313_v61 = vor.u32 %v1444_v55, %v1312_v54  ;;  %v1253_v62 = vor.u32 %v1427_v56, %v1250_v57  ;;  %v1256_v0 = vld [vmem:[%s1945_s27 + $0x40] sm:$0xf]  ;;  %v1430_v1 = vld [vmem:[%s1945_s27 + $0x44] sm:$0xf0] }
  0x39   : > { %656 = vmatpush.bf16.msra.mxu0 %v1456_v8  ;;  %1569 = vmatpush.bf16.msra.mxu2 %v1456_v8  ;;  %v1317_v63 = vor.u32 %v1443_v58, %v1314_v59  ;;  %v1320_v2 = vld [vmem:[%s1945_s27 + $0xc0] sm:$0xf]  ;;  %v1446_v3 = vld [vmem:[%s1945_s27 + $0xc4] sm:$0xf0]  ;;  %v1429_v4 = vld [vmem:[%s1945_s27 + $0x44] sm:$0xf]  ;;  %v1257_v8 = vor.u32 %v1430_v1, %v1256_v0 }
  0x3a   : > { %745 = vmatpush.bf16.msra.mxu1 %v1464_v9  ;;  %1577 = vmatpush.bf16.msra.mxu3 %v1464_v9  ;;  %v1258_v5 = vld [vmem:[%s1945_s27 + $0x48] sm:$0xf0]  ;;  %v1445_v6 = vld [vmem:[%s1945_s27 + $0xc4] sm:$0xf]  ;;  %v1321_v9 = vor.u32 %v1446_v3, %v1320_v2  ;;  %v1431_v16 = vld [vmem:[%s1945_s27 + $0x54] sm:$0xf] }
  0x3b   : > { %v1322_v7 = vld [vmem:[%s1945_s27 + $0xc8] sm:$0xf0]  ;;  %v1266_v17 = vld [vmem:[%s1945_s27 + $0x58] sm:$0xf0]  ;;  %v1447_v18 = vld [vmem:[%s1945_s27 + $0xd4] sm:$0xf] }
  0x3c   : > { %v1330_v19 = vld [vmem:[%s1945_s27 + $0xd8] sm:$0xf0]  ;;  %v1269_v22 = vor.u32 %v1431_v16, %v1266_v17  ;;  %v1433_v28 = vld [vmem:[%s1945_s27 + $0x64] sm:$0xf]  ;;  %v1274_v29 = vld [vmem:[%s1945_s27 + $0x68] sm:$0xf0] }
  0x3d   : > { %657 = vmatpush.bf16.msra.mxu0 %v1455_v10  ;;  %1570 = vmatpush.bf16.msra.mxu2 %v1455_v10  ;;  %v1261_v10 = vor.u32 %v1429_v4, %v1258_v5  ;;  %v1333_v23 = vor.u32 %v1447_v18, %v1330_v19  ;;  %v1449_v30 = vld [vmem:[%s1945_s27 + $0xe4] sm:$0xf]  ;;  %v1338_v31 = vld [vmem:[%s1945_s27 + $0xe8] sm:$0xf0]  ;;  %v1277_v34 = vor.u32 %v1433_v28, %v1274_v29  ;;  %v1435_v40 = vld [vmem:[%s1945_s27 + $0x74] sm:$0xf] }
  0x3e   : > { %746 = vmatpush.bf16.msra.mxu1 %v1463_v11  ;;  %1578 = vmatpush.bf16.msra.mxu3 %v1463_v11  ;;  %v1325_v11 = vor.u32 %v1445_v6, %v1322_v7  ;;  %v1341_v35 = vor.u32 %v1449_v30, %v1338_v31  ;;  %v1282_v41 = vld [vmem:[%s1945_s27 + $0x78] sm:$0xf0]  ;;  %v1451_v42 = vld [vmem:[%s1945_s27 + $0xf4] sm:$0xf]  ;;  %v2028_v55 = vld [vmem:[%s2154_s3] ss:$0 sm:$0xff] }
  0x3f   : > { %v1346_v43 = vld [vmem:[%s1945_s27 + $0xf8] sm:$0xf0]  ;;  %v1285_v46 = vor.u32 %v1435_v40, %v1282_v41 }
  0x40   : > { %v1349_v47 = vor.u32 %v1451_v42, %v1346_v43 }
  0x41   : > { %658 = vmatpush.bf16.msra.mxu0 %v1454_v12  ;;  %1571 = vmatpush.bf16.msra.mxu2 %v1454_v12  ;;  %v1264_v12 = vld [vmem:[%s1945_s27 + $0x50] sm:$0xf] }
  0x42   : > { %747 = vmatpush.bf16.msra.mxu1 %v1462_v13  ;;  %1579 = vmatpush.bf16.msra.mxu3 %v1462_v13  ;;  %v1432_v13 = vld [vmem:[%s1945_s27 + $0x54] sm:$0xf0] }
  0x43   : > { %v1265_v20 = vor.u32 %v1432_v13, %v1264_v12 }
  0x45   : > { %659 = vmatpush.bf16.msra.mxu0 %v1453_v14  ;;  %1572 = vmatpush.bf16.msra.mxu2 %v1453_v14  ;;  %v1328_v14 = vld [vmem:[%s1945_s27 + $0xd0] sm:$0xf] }
  0x46   : > { %748 = vmatpush.bf16.msra.mxu1 %v1461_v15  ;;  %1580 = vmatpush.bf16.msra.mxu3 %v1461_v15  ;;  %v1448_v15 = vld [vmem:[%s1945_s27 + $0xd4] sm:$0xf0] }
  0x47   : > { %v1329_v21 = vor.u32 %v1448_v15, %v1328_v14 }
  0x48   : > { %660 = vmatmul.bf16.vlgmr.msra.gmra.mxu0 %v1225_v24  ;;  %700 = vmatmul.bf16.vlgmr.msra.gmra.mxu2 %v1289_v25  ;;  %v1272_v24 = vld [vmem:[%s1945_s27 + $0x60] sm:$0xf]  ;;  %v1434_v25 = vld [vmem:[%s1945_s27 + $0x64] sm:$0xf0] }
  0x49   : > { %749 = vmatmul.bf16.vlgmr.msra.gmra.mxu1 %v1229_v26  ;;  %789 = vmatmul.bf16.vlgmr.msra.gmra.mxu3 %v1293_v27  ;;  %v1336_v26 = vld [vmem:[%s1945_s27 + $0xe0] sm:$0xf]  ;;  %v1450_v27 = vld [vmem:[%s1945_s27 + $0xe4] sm:$0xf0]  ;;  %v1273_v32 = vor.u32 %v1434_v25, %v1272_v24 }
  0x4a   : > { %v1337_v33 = vor.u32 %v1450_v27, %v1336_v26 }
  0x58   : > { %665 = vmatmul.bf16.gmra.mxu0 %v1233_v36  ;;  %705 = vmatmul.bf16.gmra.mxu2 %v1297_v37  ;;  %v1280_v36 = vld [vmem:[%s1945_s27 + $0x70] sm:$0xf]  ;;  %v1436_v37 = vld [vmem:[%s1945_s27 + $0x74] sm:$0xf0] }
  0x59   : > { %754 = vmatmul.bf16.gmra.mxu1 %v1237_v38  ;;  %794 = vmatmul.bf16.gmra.mxu3 %v1301_v39  ;;  %v1344_v38 = vld [vmem:[%s1945_s27 + $0xf0] sm:$0xf]  ;;  %v1452_v39 = vld [vmem:[%s1945_s27 + $0xf4] sm:$0xf0]  ;;  %v1281_v44 = vor.u32 %v1436_v37, %v1280_v36  ;;  %s1742_s27 = scalar_lea.hbm %s2155_s4, 256 }
  0x5a   : > { %v1345_v45 = vor.u32 %v1452_v39, %v1344_v38  ;;  %p1744_p12 = scmp.lt.s32.totalorder %s1742_s27, %s1738_s8 }
  0x5c   : > { %p1745_p13 = por %p1744_p12, %p1743_p10 }
  0x5e   : > { %p1746_p0 = pnand %p1745_p13, %p1741_p8 }
  0x68   : > { %670 = vmatmul.bf16.gmra.mxu0 %v1241_v48  ;;  %710 = vmatmul.bf16.gmra.mxu2 %v1305_v49 }
  0x69   : > { %759 = vmatmul.bf16.gmra.mxu1 %v1245_v50  ;;  %799 = vmatmul.bf16.gmra.mxu3 %v1309_v51  ;;  %v2022_v51 = vld [vmem:[%s2153_s2] ss:$0 sm:$0xff] }
  0x78   : > { %675 = vmatmul.bf16.gmra.mxu0 %v1249_v60  ;;  %715 = vmatmul.bf16.gmra.mxu2 %v1313_v61 }
  0x79   : > { %764 = vmatmul.bf16.gmra.mxu1 %v1253_v62  ;;  %804 = vmatmul.bf16.gmra.mxu3 %v1317_v63 }
  0x88   : > { %680 = vmatmul.bf16.gmra.mxu0 %v1257_v8  ;;  %720 = vmatmul.bf16.gmra.mxu2 %v1321_v9 }
  0x89   : > { %769 = vmatmul.bf16.gmra.mxu1 %v1261_v10  ;;  %809 = vmatmul.bf16.gmra.mxu3 %v1325_v11 }
  0x98   : > { %685 = vmatmul.bf16.gmra.mxu0 %v1265_v20  ;;  %725 = vmatmul.bf16.gmra.mxu2 %v1329_v21 }
  0x99   : > { %774 = vmatmul.bf16.gmra.mxu1 %v1269_v22  ;;  %814 = vmatmul.bf16.gmra.mxu3 %v1333_v23 }
  0xa8   : > { %690 = vmatmul.bf16.gmra.mxu0 %v1273_v32  ;;  %730 = vmatmul.bf16.gmra.mxu2 %v1337_v33 }
  0xa9   : > { %779 = vmatmul.bf16.gmra.mxu1 %v1277_v34  ;;  %819 = vmatmul.bf16.gmra.mxu3 %v1341_v35 }
  0xb8   : > { %695 = vmatmul.bf16.gmra.mxu0 %v1281_v44  ;;  %735 = vmatmul.bf16.gmra.mxu2 %v1345_v45 }
  0xb9   : > { %784 = vmatmul.bf16.gmra.mxu1 %v1285_v46  ;;  %824 = vmatmul.bf16.gmra.mxu3 %v1349_v47 }
  0xc5   : > { %v661_v48 = vpop.f32.mrf.mxu0 }
  0xc6   : > { %v750_v49 = vpop.f32.mrf.mxu1 }
  0xc7   : > { %v751_v50 = vadd.f32 %v750_v49, %v661_v48 }
  0xc9   : > { %v933_v54 = vmul.f32 %v2022_v51, %v751_v50 }
  0xcb   : > { %v701_v52 = vpop.f32.mrf.mxu2  ;;  %v969_v60 = vadd.f32 %v2028_v55, %v933_v54 }
  0xcc   : > { %v790_v53 = vpop.f32.mrf.mxu3 }
  0xcd   : > { %v663_v56 = vpop.f32.mrf.mxu0  ;;  %v791_v58 = vadd.f32 %v790_v53, %v701_v52  ;;  %v1001_v2 = vmax.f32 %v969_v60, 0.0 }
  0xce   : > { %v752_v57 = vpop.f32.mrf.mxu1 }
  0xcf   : > { %v753_v59 = vadd.f32 %v752_v57, %v663_v56  ;;  %v949_v62 = vmul.f32 %v2022_v51, %v791_v58 }
  0xd1   : > { %v934_v61 = vmul.f32 %v2022_v51, %v753_v59  ;;  %v985_v7 = vadd.f32 %v2028_v55, %v949_v62 }
  0xd3   : > { %v970_v63 = vadd.f32 %v2028_v55, %v934_v61  ;;  %v703_v0 = vpop.f32.mrf.mxu2  ;;  %v1017_v12 = vmax.f32 %v985_v7, 0.0 }
  0xd4   : > { %v792_v1 = vpop.f32.mrf.mxu3 }
  0xd5   : > { %v1002_v3 = vmax.f32 %v970_v63, 0.0  ;;  %v793_v4 = vadd.f32 %v792_v1, %v703_v0  ;;  %v666_v5 = vpop.f32.mrf.mxu0 }
  0xd6   : > { %v755_v6 = vpop.f32.mrf.mxu1 }
  0xd7   : > { %v1473_v8 = vpack.c.bf16 %v1002_v3, %v1001_v2  ;;  %v950_v9 = vmul.f32 %v2022_v51, %v793_v4  ;;  %v756_v11 = vadd.f32 %v755_v6, %v666_v5 }
  0xd9   : > { %1474 = vst [vmem:[%s2037_s11] sm:$0xff] %v1473_v8   ;;  %v986_v10 = vadd.f32 %v2028_v55, %v950_v9  ;;  %v935_v17 = vmul.f32 %v2022_v51, %v756_v11 }
  0xdb   : > { %v1018_v13 = vmax.f32 %v986_v10, 0.0  ;;  %v706_v14 = vpop.f32.mrf.mxu2  ;;  %v971_v22 = vadd.f32 %v2028_v55, %v935_v17 }
  0xdc   : > { %v795_v15 = vpop.f32.mrf.mxu3 }
  0xdd   : > { %v1513_v16 = vpack.c.bf16 %v1018_v13, %v1017_v12  ;;  %v668_v18 = vpop.f32.mrf.mxu0  ;;  %v796_v20 = vadd.f32 %v795_v15, %v706_v14  ;;  %v1003_v28 = vmax.f32 %v971_v22, 0.0 }
  0xde   : > { %v757_v19 = vpop.f32.mrf.mxu1 }
  0xdf   : > { %1557 = vst [vmem:[%s2037_s11 + $0x40] sm:$0xff] %v1513_v16   ;;  %v758_v21 = vadd.f32 %v757_v19, %v668_v18  ;;  %v951_v24 = vmul.f32 %v2022_v51, %v796_v20 }
  0xe1   : > { %v936_v23 = vmul.f32 %v2022_v51, %v758_v21  ;;  %v987_v33 = vadd.f32 %v2028_v55, %v951_v24 }
  0xe3   : > { %v972_v25 = vadd.f32 %v2028_v55, %v936_v23  ;;  %v708_v26 = vpop.f32.mrf.mxu2  ;;  %v1019_v38 = vmax.f32 %v987_v33, 0.0 }
  0xe4   : > { %v797_v27 = vpop.f32.mrf.mxu3 }
  0xe5   : > { %v1004_v29 = vmax.f32 %v972_v25, 0.0  ;;  %v798_v30 = vadd.f32 %v797_v27, %v708_v26  ;;  %v671_v31 = vpop.f32.mrf.mxu0 }
  0xe6   : > { %v760_v32 = vpop.f32.mrf.mxu1 }
  0xe7   : > { %v1478_v34 = vpack.c.bf16 %v1004_v29, %v1003_v28  ;;  %v952_v35 = vmul.f32 %v2022_v51, %v798_v30  ;;  %v761_v37 = vadd.f32 %v760_v32, %v671_v31 }
  0xe9   : > { %1550 = vst [vmem:[%s2037_s11 + $0x8] sm:$0xff] %v1478_v34   ;;  %v988_v36 = vadd.f32 %v2028_v55, %v952_v35  ;;  %v937_v43 = vmul.f32 %v2022_v51, %v761_v37 }
  0xeb   : > { %v1020_v39 = vmax.f32 %v988_v36, 0.0  ;;  %v711_v40 = vpop.f32.mrf.mxu2  ;;  %v973_v48 = vadd.f32 %v2028_v55, %v937_v43 }
  0xec   : > { %v800_v41 = vpop.f32.mrf.mxu3 }
  0xed   : > { %v1518_v42 = vpack.c.bf16 %v1020_v39, %v1019_v38  ;;  %v673_v44 = vpop.f32.mrf.mxu0  ;;  %v801_v46 = vadd.f32 %v800_v41, %v711_v40  ;;  %v1005_v56 = vmax.f32 %v973_v48, 0.0 }
  0xee   : > { %v762_v45 = vpop.f32.mrf.mxu1 }
  0xef   : > { %1558 = vst [vmem:[%s2037_s11 + $0x48] sm:$0xff] %v1518_v42   ;;  %v763_v47 = vadd.f32 %v762_v45, %v673_v44  ;;  %v953_v50 = vmul.f32 %v2022_v51, %v801_v46 }
  0xf1   : > { %v938_v49 = vmul.f32 %v2022_v51, %v763_v47  ;;  %v989_v61 = vadd.f32 %v2028_v55, %v953_v50 }
  0xf3   : > { %v974_v52 = vadd.f32 %v2028_v55, %v938_v49  ;;  %v713_v53 = vpop.f32.mrf.mxu2  ;;  %v1021_v2 = vmax.f32 %v989_v61, 0.0 }
  0xf4   : > { %v802_v54 = vpop.f32.mrf.mxu3 }
  0xf5   : > { %v1006_v57 = vmax.f32 %v974_v52, 0.0  ;;  %v803_v58 = vadd.f32 %v802_v54, %v713_v53  ;;  %v676_v59 = vpop.f32.mrf.mxu0 }
  0xf6   : > { %v765_v60 = vpop.f32.mrf.mxu1 }
  0xf7   : > { %v1483_v62 = vpack.c.bf16 %v1006_v57, %v1005_v56  ;;  %v954_v63 = vmul.f32 %v2022_v51, %v803_v58  ;;  %v766_v1 = vadd.f32 %v765_v60, %v676_v59 }
  0xf9   : > { %1551 = vst [vmem:[%s2037_s11 + $0x10] sm:$0xff] %v1483_v62   ;;  %v990_v0 = vadd.f32 %v2028_v55, %v954_v63  ;;  %v939_v7 = vmul.f32 %v2022_v51, %v766_v1 }
  0xfb   : > { %v1022_v3 = vmax.f32 %v990_v0, 0.0  ;;  %v716_v4 = vpop.f32.mrf.mxu2  ;;  %v975_v12 = vadd.f32 %v2028_v55, %v939_v7 }
  0xfc   : > { %v805_v5 = vpop.f32.mrf.mxu3 }
  0xfd   : > { %v1523_v6 = vpack.c.bf16 %v1022_v3, %v1021_v2  ;;  %v678_v8 = vpop.f32.mrf.mxu0  ;;  %v806_v10 = vadd.f32 %v805_v5, %v716_v4  ;;  %v1007_v18 = vmax.f32 %v975_v12, 0.0 }
  0xfe   : > { %v767_v9 = vpop.f32.mrf.mxu1 }
  0xff   : > { %1559 = vst [vmem:[%s2037_s11 + $0x50] sm:$0xff] %v1523_v6   ;;  %v768_v11 = vadd.f32 %v767_v9, %v678_v8  ;;  %v955_v14 = vmul.f32 %v2022_v51, %v806_v10 }
 0x101   : > { %v940_v13 = vmul.f32 %v2022_v51, %v768_v11  ;;  %v991_v23 = vadd.f32 %v2028_v55, %v955_v14 }
 0x103   : > { %v976_v15 = vadd.f32 %v2028_v55, %v940_v13  ;;  %v718_v16 = vpop.f32.mrf.mxu2  ;;  %v1023_v28 = vmax.f32 %v991_v23, 0.0 }
 0x104   : > { %v807_v17 = vpop.f32.mrf.mxu3 }
 0x105   : > { %v1008_v19 = vmax.f32 %v976_v15, 0.0  ;;  %v808_v20 = vadd.f32 %v807_v17, %v718_v16  ;;  %v681_v21 = vpop.f32.mrf.mxu0 }
 0x106   : > { %v770_v22 = vpop.f32.mrf.mxu1 }
 0x107   : > { %v1488_v24 = vpack.c.bf16 %v1008_v19, %v1007_v18  ;;  %v956_v25 = vmul.f32 %v2022_v51, %v808_v20  ;;  %v771_v27 = vadd.f32 %v770_v22, %v681_v21 }
 0x109   : > { %1552 = vst [vmem:[%s2037_s11 + $0x18] sm:$0xff] %v1488_v24   ;;  %v992_v26 = vadd.f32 %v2028_v55, %v956_v25  ;;  %v941_v33 = vmul.f32 %v2022_v51, %v771_v27 }
 0x10b   : > { %v1024_v29 = vmax.f32 %v992_v26, 0.0  ;;  %v721_v30 = vpop.f32.mrf.mxu2  ;;  %v977_v38 = vadd.f32 %v2028_v55, %v941_v33 }
 0x10c   : > { %v810_v31 = vpop.f32.mrf.mxu3 }
 0x10d   : > { %v1528_v32 = vpack.c.bf16 %v1024_v29, %v1023_v28  ;;  %v683_v34 = vpop.f32.mrf.mxu0  ;;  %v811_v36 = vadd.f32 %v810_v31, %v721_v30  ;;  %v1009_v44 = vmax.f32 %v977_v38, 0.0 }
 0x10e   : > { %v772_v35 = vpop.f32.mrf.mxu1 }
 0x10f   : > { %1560 = vst [vmem:[%s2037_s11 + $0x58] sm:$0xff] %v1528_v32   ;;  %v773_v37 = vadd.f32 %v772_v35, %v683_v34  ;;  %v957_v40 = vmul.f32 %v2022_v51, %v811_v36 }
 0x111   : > { %v942_v39 = vmul.f32 %v2022_v51, %v773_v37  ;;  %v993_v49 = vadd.f32 %v2028_v55, %v957_v40 }
 0x113   : > { %v978_v41 = vadd.f32 %v2028_v55, %v942_v39  ;;  %v723_v42 = vpop.f32.mrf.mxu2  ;;  %v1025_v56 = vmax.f32 %v993_v49, 0.0 }
 0x114   : > { %v812_v43 = vpop.f32.mrf.mxu3 }
 0x115   : > { %v1010_v45 = vmax.f32 %v978_v41, 0.0  ;;  %v813_v46 = vadd.f32 %v812_v43, %v723_v42  ;;  %v686_v47 = vpop.f32.mrf.mxu0 }
 0x116   : > { %v775_v48 = vpop.f32.mrf.mxu1 }
 0x117   : > { %v1493_v50 = vpack.c.bf16 %v1010_v45, %v1009_v44  ;;  %v958_v52 = vmul.f32 %v2022_v51, %v813_v46  ;;  %v776_v54 = vadd.f32 %v775_v48, %v686_v47 }
 0x119   : > { %1553 = vst [vmem:[%s2037_s11 + $0x20] sm:$0xff] %v1493_v50   ;;  %v994_v53 = vadd.f32 %v2028_v55, %v958_v52  ;;  %v943_v61 = vmul.f32 %v2022_v51, %v776_v54 }
 0x11b   : > { %v1026_v57 = vmax.f32 %v994_v53, 0.0  ;;  %v726_v58 = vpop.f32.mrf.mxu2  ;;  %v979_v2 = vadd.f32 %v2028_v55, %v943_v61 }
 0x11c   : > { %v815_v59 = vpop.f32.mrf.mxu3 }
 0x11d   : > { %v1533_v60 = vpack.c.bf16 %v1026_v57, %v1025_v56  ;;  %v688_v62 = vpop.f32.mrf.mxu0  ;;  %v816_v0 = vadd.f32 %v815_v59, %v726_v58  ;;  %v1011_v8 = vmax.f32 %v979_v2, 0.0 }
 0x11e   : > { %v777_v63 = vpop.f32.mrf.mxu1 }
 0x11f   : > { %1561 = vst [vmem:[%s2037_s11 + $0x60] sm:$0xff] %v1533_v60   ;;  %v778_v1 = vadd.f32 %v777_v63, %v688_v62  ;;  %v959_v4 = vmul.f32 %v2022_v51, %v816_v0 }
 0x121   : > { %v944_v3 = vmul.f32 %v2022_v51, %v778_v1  ;;  %v995_v13 = vadd.f32 %v2028_v55, %v959_v4 }
 0x123   : > { %v980_v5 = vadd.f32 %v2028_v55, %v944_v3  ;;  %v728_v6 = vpop.f32.mrf.mxu2  ;;  %v1027_v18 = vmax.f32 %v995_v13, 0.0 }
 0x124   : > { %v817_v7 = vpop.f32.mrf.mxu3 }
 0x125   : > { %v1012_v9 = vmax.f32 %v980_v5, 0.0  ;;  %v818_v10 = vadd.f32 %v817_v7, %v728_v6  ;;  %v691_v11 = vpop.f32.mrf.mxu0 }
 0x126   : > { %v780_v12 = vpop.f32.mrf.mxu1 }
 0x127   : > { %v1498_v14 = vpack.c.bf16 %v1012_v9, %v1011_v8  ;;  %v960_v15 = vmul.f32 %v2022_v51, %v818_v10  ;;  %v781_v17 = vadd.f32 %v780_v12, %v691_v11 }
 0x129   : > { %1554 = vst [vmem:[%s2037_s11 + $0x28] sm:$0xff] %v1498_v14   ;;  %v996_v16 = vadd.f32 %v2028_v55, %v960_v15  ;;  %v945_v23 = vmul.f32 %v2022_v51, %v781_v17 }
 0x12b   : > { %v1028_v19 = vmax.f32 %v996_v16, 0.0  ;;  %v731_v20 = vpop.f32.mrf.mxu2  ;;  %v981_v28 = vadd.f32 %v2028_v55, %v945_v23 }
 0x12c   : > { %v820_v21 = vpop.f32.mrf.mxu3 }
 0x12d   : > { %v1538_v22 = vpack.c.bf16 %v1028_v19, %v1027_v18  ;;  %v693_v24 = vpop.f32.mrf.mxu0  ;;  %v821_v26 = vadd.f32 %v820_v21, %v731_v20  ;;  %v1013_v34 = vmax.f32 %v981_v28, 0.0 }
 0x12e   : > { %v782_v25 = vpop.f32.mrf.mxu1 }
 0x12f   : > { %1562 = vst [vmem:[%s2037_s11 + $0x68] sm:$0xff] %v1538_v22   ;;  %v783_v27 = vadd.f32 %v782_v25, %v693_v24  ;;  %v961_v30 = vmul.f32 %v2022_v51, %v821_v26 }
 0x131   : > { %v946_v29 = vmul.f32 %v2022_v51, %v783_v27  ;;  %v997_v39 = vadd.f32 %v2028_v55, %v961_v30 }
 0x133   : > { %v982_v31 = vadd.f32 %v2028_v55, %v946_v29  ;;  %v733_v32 = vpop.f32.mrf.mxu2  ;;  %v1029_v44 = vmax.f32 %v997_v39, 0.0 }
 0x134   : > { %v822_v33 = vpop.f32.mrf.mxu3 }
 0x135   : > { %v1014_v35 = vmax.f32 %v982_v31, 0.0  ;;  %v823_v36 = vadd.f32 %v822_v33, %v733_v32  ;;  %v696_v37 = vpop.f32.mrf.mxu0 }
 0x136   : > { %v785_v38 = vpop.f32.mrf.mxu1 }
 0x137   : > { %v1503_v40 = vpack.c.bf16 %v1014_v35, %v1013_v34  ;;  %v962_v41 = vmul.f32 %v2022_v51, %v823_v36  ;;  %v786_v43 = vadd.f32 %v785_v38, %v696_v37 }
 0x139   : > { %1555 = vst [vmem:[%s2037_s11 + $0x30] sm:$0xff] %v1503_v40   ;;  %v998_v42 = vadd.f32 %v2028_v55, %v962_v41  ;;  %v947_v49 = vmul.f32 %v2022_v51, %v786_v43 }
 0x13b   : > { %v1030_v45 = vmax.f32 %v998_v42, 0.0  ;;  %v736_v46 = vpop.f32.mrf.mxu2  ;;  %v983_v56 = vadd.f32 %v2028_v55, %v947_v49 }
 0x13c   : > { %v825_v47 = vpop.f32.mrf.mxu3 }
 0x13d   : > { %v1543_v48 = vpack.c.bf16 %v1030_v45, %v1029_v44  ;;  %v698_v50 = vpop.f32.mrf.mxu0  ;;  %v826_v53 = vadd.f32 %v825_v47, %v736_v46  ;;  %v1015_v62 = vmax.f32 %v983_v56, 0.0 }
 0x13e   : > { %v787_v52 = vpop.f32.mrf.mxu1 }
 0x13f   : > { %1563 = vst [vmem:[%s2037_s11 + $0x70] sm:$0xff] %v1543_v48   ;;  %v788_v54 = vadd.f32 %v787_v52, %v698_v50  ;;  %v963_v58 = vmul.f32 %v2022_v51, %v826_v53 }
 0x141   : > { %v948_v57 = vmul.f32 %v2022_v51, %v788_v54  ;;  %v999_v1 = vadd.f32 %v2028_v55, %v963_v58 }
 0x143   : > { %v984_v59 = vadd.f32 %v2028_v55, %v948_v57  ;;  %v738_v60 = vpop.f32.mrf.mxu2  ;;  %v1031_v5 = vmax.f32 %v999_v1, 0.0 }
 0x144   : > { %v827_v61 = vpop.f32.mrf.mxu3 }
 0x145   : > { %v1016_v63 = vmax.f32 %v984_v59, 0.0  ;;  %v828_v0 = vadd.f32 %v827_v61, %v738_v60 }
 0x147   : > { %v1508_v2 = vpack.c.bf16 %v1016_v63, %v1015_v62  ;;  %v964_v3 = vmul.f32 %v2022_v51, %v828_v0 }
 0x149   : > { %1556 = vst [vmem:[%s2037_s11 + $0x38] sm:$0xff] %v1508_v2   ;;  %v1000_v4 = vadd.f32 %v2028_v55, %v964_v3 }
 0x14b   : > { %v1032_v6 = vmax.f32 %v1000_v4, 0.0 }
 0x14d   : > { %v1548_v7 = vpack.c.bf16 %v1032_v6, %v1031_v5 }
 0x14f   : > { %1564 = vst [vmem:[%s2037_s11 + $0x78] sm:$0xff] %v1548_v7  }
 0x150   : > { %1749 = shalt.err (!%p1746_p0)
}
 0x151   : > { %s1815_s10 = smov 64   ;;  %s1816_s25 = smov 4  }
 0x152   : > { %1587 = dma.vmem_to_hbm [thread:$0]  (%p1921_p5), %s1111_s18, 2048, %s1113_s6, %s1098_s7, %s1815_s10, %s1815_s10, %s1816_s25  }
 0x153 PF: > { %s1127_s30 = sand.u32 1, %s1788_s15   ;;  %p1598_p3 = pnand %p1213_p11, %p1891_p6 }
 0x154   : > { %s1128_s9 = scalar_lea.sflag [#allocation5], %s1127_s30 }
 0x155   : > { %p1599_p7 = pneg %p1598_p3 }
 0x157   : > { %1783 = dma.done.wait (%p1599_p7), %s1128_s9, 2048  }
 0x158   : > { %1785 = vsyncadd (%p1599_p7), %s1128_s9, 4294965248  ;;  %s21_s20 = sadd.s32 1, %s1808_s20   ;;  %s2167_s12 = sld [smem:[#allocation12_spill]] }
 0x159   : > { %p18_p9 = scmp.ge.s32.totalorder %s21_s20, 4   ;;  %s2168_s15 = smov %s1792_s16 }
 0x15a   : > { %s2169_s16 = smov %s1796_s17  ;;  %s2170_s17 = smov %s1930_s22 }
 0x15b   : > { %s2171_s18 = smov %s1804_s19  ;;  %20 = sbr.rel (!%p18_p9) target bundleno = 9 (0x9), region = 94 }
 0x15e   : > { %s2172_s19 = smov %s2167_s12 }
 0x160   :  { %1134 = vsyncpa [#allocation4], 1 }
 0x161   :  { %1136 = vsyncpa [#allocation4 + $0x1], 1 }
 0x162   :  { %1137 = vsyncpa [#allocation7], 1 }
 0x163   :  { %1138 = vsyncpa [#allocation5], 1 }
 0x164   :  { %1140 = vsyncpa [#allocation5 + $0x1], 1 }

</bundles_post_ra>
